<compile_context>
chip_gen: v7x
topology: tpu7x:2x2x1
jax: 0.10.0
libtpu: 0.0.40
codegen_flags: <defaults>
</compile_context>

<pallas_src>
import math
import jax
import jax.numpy as jnp
from jax.experimental import pallas as pl
from jax.experimental.pallas import tpu as pltpu

LN_EPS = 1e-7                    # DebertaV2 layer_norm_eps
_INV_SQRT2 = 1.0 / math.sqrt(2.0)
_LANES = 128


# ----------------------------------------------------------------------------- kernels
def _transform(x_bf16, w1_tile, prm_tile):
    """dense(H->H) + exact-erf GELU + LayerNorm.  bf16 matmul inputs, f32 math."""
    h = jnp.dot(x_bf16, w1_tile, preferred_element_type=jnp.float32)
    h = h + prm_tile[0:1, :]                             # dense bias
    h = 0.5 * h * (1.0 + jax.lax.erf(h * _INV_SQRT2))    # exact (erf) GELU
    mean = jnp.mean(h, axis=-1, keepdims=True)
    var = jnp.mean(jnp.square(h - mean), axis=-1, keepdims=True)
    scale = jax.lax.rsqrt(var + LN_EPS) * prm_tile[1:2, :]   # fold gamma into scale
    return (h - mean) * scale + prm_tile[2:3, :]             # + LN beta


def _mlm_head_sliced_kernel(x_ref, w1_ref, prm_ref, w2_ref, b2_ref, out_ref):
    """One grid step == one classifier head; decoder restricted (and lane-padded)
    to the vocab columns the forward pass actually consumes (pos/neg token ids)."""
    h = _transform(x_ref[0], w1_ref[0], prm_ref[0])
    scores = jnp.dot(h.astype(w2_ref.dtype), w2_ref[0],
                     preferred_element_type=jnp.float32) + b2_ref[0]
    out_ref[0] = scores.astype(out_ref.dtype)


def _mlm_head_full_vocab_kernel(x_ref, w1_ref, prm_ref, w2_ref, b2_ref, out_ref,
                                h_scratch):
    """grid = (T heads, V tiles): the transform is computed once per head (v == 0)
    into VMEM scratch and reused for every vocab tile."""
    @pl.when(pl.program_id(1) == 0)
    def _():
        h = _transform(x_ref[0], w1_ref[0], prm_ref[0])
        h_scratch[...] = h.astype(h_scratch.dtype)

    scores = jnp.dot(h_scratch[...], w2_ref[0],
                     preferred_element_type=jnp.float32) + b2_ref[0]
    out_ref[0] = scores.astype(out_ref.dtype)


# ----------------------------------------------------------------------------- wrappers
def _cost_estimate(T, B, H, N, in_arrays, out_bytes):
    flops = 2 * T * B * H * (H + N)
    transcendentals = T * B * H                       # one erf per transform element
    bytes_accessed = int(out_bytes) + sum(int(a.size) * a.dtype.itemsize
                                          for a in in_arrays)
    return pl.CostEstimate(flops=flops, transcendentals=transcendentals,
                           bytes_accessed=bytes_accessed)


def mlm_heads_sliced_pallas(x_tbh, w1, prm, w2_sel, b2_sel):
    """x_tbh: (T, B, H) bf16; w1: (T, H, H) bf16; prm: (T, 3, H) f32 with rows
    [dense bias, LN gamma, LN beta]; w2_sel: (T, H, n_pad) bf16; b2_sel: (T, 1, n_pad)
    f32 (n_pad a multiple of 128).  Returns (T, B, n_pad) f32 scores at the selected
    (zero-padded) vocab columns."""
    T, B, H = x_tbh.shape
    n_pad = w2_sel.shape[-1]
    tmap = lambda t: (t, 0, 0)
    return pl.pallas_call(
        _mlm_head_sliced_kernel,
        out_shape=jax.ShapeDtypeStruct((T, B, n_pad), jnp.float32),
        grid_spec=pltpu.PrefetchScalarGridSpec(
            num_scalar_prefetch=0,
            grid=(T,),
            in_specs=[
                pl.BlockSpec((1, B, H), tmap),        # activations (bf16)
                pl.BlockSpec((1, H, H), tmap),        # dense W (bf16)
                pl.BlockSpec((1, 3, H), tmap),        # packed bias / gamma / beta
                pl.BlockSpec((1, H, n_pad), tmap),    # sliced+padded decoder W (bf16)
                pl.BlockSpec((1, 1, n_pad), tmap),    # sliced+padded decoder bias
            ],
            out_specs=pl.BlockSpec((1, B, n_pad), tmap),
        ),
        compiler_params=pltpu.CompilerParams(
            dimension_semantics=("parallel",)),        # heads across megacore TCs
        cost_estimate=_cost_estimate(T, B, H, n_pad,
                                     (x_tbh, w1, prm, w2_sel, b2_sel),
                                     T * B * n_pad * 4),
    )(x_tbh, w1, prm, w2_sel, b2_sel)


def mlm_heads_full_vocab_pallas(x_tbh, w1, prm, w2, b2, *, tile_v=None,
                                vmem_limit_bytes=None):
    """Full-vocab variant (only needed if the complete prediction_scores tensor is
    required, e.g. the top-token debug path).  V is tiled on a second grid axis.

    tile_v guidance: keep 2 double-buffered bf16 tiles (H*tile_v + H*H) well inside
    VMEM.  v7x has 64 MiB/TC -> tile_v ~4096 at H=1024; v6e/v5e can go larger, but
    raise vmem_limit_bytes above the 32/16 MiB scoped defaults."""
    T, B, H = x_tbh.shape
    V = w2.shape[-1]
    if tile_v is None:
        tile_v = min(V, 4096)
    if V % tile_v != 0:
        tile_v = V   # TODO(synk): mask/pad the tail vocab tile instead of falling back
    head_map = lambda t, v: (t, 0, 0)
    vmap = lambda t, v: (t, 0, v)
    return pl.pallas_call(
        _mlm_head_full_vocab_kernel,
        out_shape=jax.ShapeDtypeStruct((T, B, V), jnp.float32),
        grid_spec=pltpu.PrefetchScalarGridSpec(
            num_scalar_prefetch=0,
            grid=(T, V // tile_v),
            in_specs=[
                pl.BlockSpec((1, B, H), head_map),
                pl.BlockSpec((1, H, H), head_map),
                pl.BlockSpec((1, 3, H), head_map),
                pl.BlockSpec((1, H, tile_v), vmap),   # streamed decoder weight tile
                pl.BlockSpec((1, 1, tile_v), vmap),
            ],
            out_specs=pl.BlockSpec((1, B, tile_v), vmap),
            scratch_shapes=[pltpu.VMEM((B, H), jnp.bfloat16)],
        ),
        compiler_params=pltpu.CompilerParams(
            dimension_semantics=("parallel", "arbitrary"),
            vmem_limit_bytes=vmem_limit_bytes),
        cost_estimate=_cost_estimate(T, B, H, V, (x_tbh, w1, prm, w2, b2),
                                     T * B * V * 4),
    )(x_tbh, w1, prm, w2, b2)


# ----------------------------------------------------------------------------- glue
def _pad_last_dim(a, width):
    pad = width - a.shape[-1]
    if pad > 0:
        a = jnp.pad(a, [(0, 0)] * (a.ndim - 1) + [(0, pad)])
    return a


def _prepare_head_inputs(sequence_output, target_token_idxs, w1, b1, gamma, beta):
    """Gather prompt-target activations, pad batch to a sublane multiple, cast the
    matmul operands to bf16, and pack the small per-head vectors into (T, 3, H)."""
    idxs = target_token_idxs[0]                          # row 0, as in the torch code
    gathered = sequence_output[:, idxs, :]               # (bs, T, H)
    x_tbh = jnp.transpose(gathered, (1, 0, 2))           # (T, bs, H)
    bs = x_tbh.shape[1]
    b_pad = -(-bs // 8) * 8
    if b_pad != bs:
        x_tbh = jnp.pad(x_tbh, ((0, 0), (0, b_pad - bs), (0, 0)))
    x_bf = x_tbh.astype(jnp.bfloat16)
    w1_bf = w1.astype(jnp.bfloat16)
    prm = jnp.concatenate([b1, gamma, beta], axis=1).astype(jnp.float32)  # (T, 3, H)
    return x_bf, w1_bf, prm, bs


def _bce_mean(p, y):
    # torch.nn.BCELoss(reduction='mean') (log clamped for numerical safety)
    eps = 1e-12
    p = jnp.clip(p, eps, 1.0 - eps)
    return -jnp.mean(y * jnp.log(p) + (1.0 - y) * jnp.log(1.0 - p))


def feedback_model_prompt_forward(sequence_output, target_token_idxs, params,
                                  labels=None, pos_tok_id=None, neg_tok_id=None,
                                  only_pos_tok=False, loss_fn='bce',
                                  target_names=(), lb=1.0, ub=5.0):
    """Mirrors FeedbackModelPrompt.forward AFTER the backbone call."""
    w1, b1, gamma, beta, w2, b2 = params

    pos_ids = list(pos_tok_id) if isinstance(pos_tok_id, (list, tuple)) else [pos_tok_id]
    neg_ids = list(neg_tok_id) if isinstance(neg_tok_id, (list, tuple)) else [neg_tok_id]
    tok_ids = jnp.asarray(pos_ids + neg_ids, dtype=jnp.int32)
    n_pos = len(pos_ids)
    n_tok = len(pos_ids) + len(neg_ids)
    n_pad = -(-n_tok // _LANES) * _LANES                 # lane-dense output width

    # Only these decoder columns are ever consumed downstream -> slice in glue so the
    # kernel never streams the full (T, H, V) decoder weights; zero-pad to 128 lanes
    # so the kernel's output stores are unmasked.
    w2_sel = _pad_last_dim(jnp.take(w2, tok_ids, axis=2), n_pad).astype(jnp.bfloat16)
    b2_sel = _pad_last_dim(jnp.take(b2, tok_ids, axis=2), n_pad).astype(jnp.float32)

    x_bf, w1_bf, prm, bs = _prepare_head_inputs(
        sequence_output, target_token_idxs, w1, b1, gamma, beta)

    sel = mlm_heads_sliced_pallas(x_bf, w1_bf, prm, w2_sel, b2_sel)   # (T, B_pad, n_pad)
    sel = jnp.transpose(sel[:, :bs, :n_tok], (1, 0, 2))               # (bs, T, n_tok)

    pos_scores = jnp.mean(sel[:, :, :n_pos], axis=-1, keepdims=True)
    neg_scores = jnp.mean(sel[:, :, n_pos:], axis=-1, keepdims=True)

    if only_pos_tok:
        logits = jnp.squeeze(pos_scores, axis=-1)   # keep batch dim even when bs == 1
    else:
        logits = jnp.concatenate([pos_scores, neg_scores], axis=-1)
    if loss_fn == 'bce':
        logits = jax.nn.softmax(logits, axis=-1)
    if not only_pos_tok:
        logits = logits[:, :, 0]

    loss = None
    loss_dict = {}
    if labels is not None:
        if loss_fn == 'bce':
            labels = (labels - lb) / (ub - lb)
        loss = _bce_mean(logits, labels)
        loss_dict['loss'] = loss
        for idx, name in enumerate(target_names):
            loss_dict[name] = _bce_mean(logits[:, idx].reshape(-1, 1),
                                        labels[:, idx].reshape(-1, 1))
    return logits, loss, loss_dict


def _mlm_heads_reference(x_bf, w1_bf, prm, w2, b2):
    """Pure-JAX reference of the kernel math (matching its bf16 quantization points;
    f32 accumulation)."""
    h = jnp.einsum('tbh,thk->tbk', x_bf.astype(jnp.float32),
                   w1_bf.astype(jnp.float32)) + prm[:, 0:1, :]
    h = 0.5 * h * (1.0 + jax.lax.erf(h * _INV_SQRT2))
    mean = jnp.mean(h, axis=-1, keepdims=True)
    var = jnp.mean(jnp.square(h - mean), axis=-1, keepdims=True)
    h = (h - mean) * jax.lax.rsqrt(var + LN_EPS) * prm[:, 1:2, :] + prm[:, 2:3, :]
    h = h.astype(jnp.bfloat16).astype(jnp.float32)
    return jnp.einsum('tbk,tkv->tbv', h, w2.astype(jnp.float32)) + b2


# ----------------------------------------------------------------------------- demo
if __name__ == "__main__":
    # Small synthetic config consistent with the module's forward.
    bs, seq, hidden, vocab = 2, 16, 128, 256
    target_names = ["cohesion", "syntax", "vocabulary",
                    "phraseology", "grammar", "conventions"]
    T = len(target_names)
    pos_tok_id, neg_tok_id = 7, 13

    key = jax.random.PRNGKey(0)
    k_seq, k_w1, k_w2, k_lab = jax.random.split(key, 4)

    # Stand-in for the DeBERTa backbone sequence_output (see TODO(synk) above).
    sequence_output = jax.random.normal(k_seq, (bs, seq, hidden), dtype=jnp.float32)
    target_token_idxs = jnp.tile(
        jnp.arange(1, 1 + 2 * T, 2, dtype=jnp.int32)[None, :], (bs, 1))

    # Deterministic per-target DebertaV2OnlyMLMHead parameters (std=0.02 init).
    w1 = 0.02 * jax.random.normal(k_w1, (T, hidden, hidden), dtype=jnp.float32)
    b1 = jnp.zeros((T, 1, hidden), dtype=jnp.float32)
    gamma = jnp.ones((T, 1, hidden), dtype=jnp.float32)
    beta = jnp.zeros((T, 1, hidden), dtype=jnp.float32)
    w2 = 0.02 * jax.random.normal(k_w2, (T, hidden, vocab), dtype=jnp.float32)
    b2 = jnp.zeros((T, 1, vocab), dtype=jnp.float32)
    params = (w1, b1, gamma, beta, w2, b2)

    labels = jax.random.uniform(k_lab, (bs, T), minval=1.0, maxval=5.0,
                                dtype=jnp.float32)

    logits, loss, loss_dict = feedback_model_prompt_forward(
        sequence_output, target_token_idxs, params,
        labels=labels, pos_tok_id=pos_tok_id, neg_tok_id=neg_tok_id,
        only_pos_tok=False, loss_fn='bce', target_names=target_names)
    jax.block_until_ready((logits, loss))

    # --- sanity checks vs pure-JAX reference ---------------------------------
    x_bf, w1_bf, prm, _bs = _prepare_head_inputs(
        sequence_output, target_token_idxs, w1, b1, gamma, beta)
    tok_ids = jnp.asarray([pos_tok_id, neg_tok_id], dtype=jnp.int32)
    n_tok = int(tok_ids.shape[0])
    n_pad = -(-n_tok // _LANES) * _LANES
    w2_sel = _pad_last_dim(jnp.take(w2, tok_ids, axis=2), n_pad).astype(jnp.bfloat16)
    b2_sel = _pad_last_dim(jnp.take(b2, tok_ids, axis=2), n_pad).astype(jnp.float32)

    sel_k = mlm_heads_sliced_pallas(x_bf, w1_bf, prm, w2_sel, b2_sel)[:, :, :n_tok]
    sel_r = _mlm_heads_reference(x_bf, w1_bf, prm, w2_sel, b2_sel)[:, :, :n_tok]
    assert jnp.allclose(sel_k, sel_r, atol=5e-3, rtol=5e-3), \
        "sliced-decoder kernel mismatch vs reference"

    # full-vocab (V-tiled) variant, exercised with 2 vocab tiles of 128 lanes.
    w2_bf = w2.astype(jnp.bfloat16)
    full_k = mlm_heads_full_vocab_pallas(x_bf, w1_bf, prm, w2_bf, b2, tile_v=128)
    full_r = _mlm_heads_reference(x_bf, w1_bf, prm, w2_bf, b2)
    assert jnp.allclose(full_k, full_r, atol=5e-3, rtol=5e-3), \
        "full-vocab kernel mismatch vs reference"
    assert jnp.allclose(jnp.take(full_k, tok_ids, axis=-1), sel_k,
                        atol=5e-3, rtol=5e-3)

    assert logits.shape == (bs, T)
    assert jnp.isfinite(loss)

    print("KERNEL_OK")
</pallas_src>

<mosaic_0001>
module attributes {stable_mosaic.version = 11 : i64} {
  func.func @_mlm_head_sliced_kernel(%arg0: i32, %arg1: memref<1x8x128xbf16, #tpu.memory_space<vmem>>, %arg2: memref<1x128x128xbf16, #tpu.memory_space<vmem>>, %arg3: memref<1x3x128xf32, #tpu.memory_space<vmem>>, %arg4: memref<1x128x128xbf16, #tpu.memory_space<vmem>>, %arg5: memref<1x1x128xf32, #tpu.memory_space<vmem>>, %arg6: memref<1x8x128xf32, #tpu.memory_space<vmem>>) attributes {dimension_semantics = [#tpu.dimension_semantics<parallel>], iteration_bounds = array<i64: 6>, scalar_prefetch = 0 : i64, scratch_operands = 0 : i64, tpu.core_type = #tpu.core_type<tc>, window_params = [{transform_indices = @transform_0, window_bounds = array<i64: 1, 8, 128>}, {transform_indices = @transform_1, window_bounds = array<i64: 1, 128, 128>}, {transform_indices = @transform_2, window_bounds = array<i64: 1, 3, 128>}, {transform_indices = @transform_3, window_bounds = array<i64: 1, 128, 128>}, {transform_indices = @transform_4, window_bounds = array<i64: 1, 1, 128>}, {transform_indices = @transform_5, window_bounds = array<i64: 1, 8, 128>}]} {
    %c0 = arith.constant 0 : index
    %c0_0 = arith.constant 0 : index
    %c0_1 = arith.constant 0 : index
    %0 = vector.load %arg1[%c0, %c0_0, %c0_1] : memref<1x8x128xbf16, #tpu.memory_space<vmem>>, vector<1x8x128xbf16>
    %1 = vector.shape_cast %0 : vector<1x8x128xbf16> to vector<8x128xbf16>
    %c0_2 = arith.constant 0 : index
    %c0_3 = arith.constant 0 : index
    %c0_4 = arith.constant 0 : index
    %2 = vector.load %arg2[%c0_2, %c0_3, %c0_4] : memref<1x128x128xbf16, #tpu.memory_space<vmem>>, vector<1x128x128xbf16>
    %3 = vector.shape_cast %2 : vector<1x128x128xbf16> to vector<128x128xbf16>
    %c0_5 = arith.constant 0 : index
    %c0_6 = arith.constant 0 : index
    %c0_7 = arith.constant 0 : index
    %4 = vector.load %arg3[%c0_5, %c0_6, %c0_7] : memref<1x3x128xf32, #tpu.memory_space<vmem>>, vector<1x3x128xf32>
    %5 = vector.shape_cast %4 : vector<1x3x128xf32> to vector<3x128xf32>
    %cst = arith.constant dense<0.000000e+00> : vector<8x128xf32>
    %6 = tpu.matmul %1, %3, %cst {dimension_numbers = #tpu.dot_dimension_numbers<[1], [0], [0], [1], [0, 0, 1, 1], [], []>} : vector<8x128xbf16>, vector<128x128xbf16>, vector<8x128xf32> -> vector<8x128xf32>
    %7 = vector.extract_strided_slice %5 {offsets = [0, 0], sizes = [1, 128], strides = [1, 1]} : vector<3x128xf32> to vector<1x128xf32>
    %8 = vector.broadcast %7 : vector<1x128xf32> to vector<8x128xf32>
    %9 = arith.addf %6, %8 : vector<8x128xf32>
    %cst_8 = arith.constant 5.000000e-01 : f32
    %10 = vector.broadcast %cst_8 : f32 to vector<8x128xf32>
    %11 = arith.mulf %10, %9 : vector<8x128xf32>
    %cst_9 = arith.constant 0.707106769 : f32
    %12 = vector.broadcast %cst_9 : f32 to vector<8x128xf32>
    %13 = arith.mulf %9, %12 : vector<8x128xf32>
    %14 = math.erf %13 : vector<8x128xf32>
    %cst_10 = arith.constant 1.000000e+00 : f32
    %15 = vector.broadcast %cst_10 : f32 to vector<8x128xf32>
    %16 = arith.addf %15, %14 : vector<8x128xf32>
    %17 = arith.mulf %11, %16 : vector<8x128xf32>
    %cst_11 = arith.constant dense<0.000000e+00> : vector<8xf32>
    %18 = vector.multi_reduction <add>, %17, %cst_11 [1] : vector<8x128xf32> to vector<8xf32>
    %19 = vector.shape_cast %18 : vector<8xf32> to vector<8x1xf32>
    %cst_12 = arith.constant 1.280000e+02 : f32
    %20 = vector.broadcast %cst_12 : f32 to vector<8x1xf32>
    %21 = arith.divf %19, %20 : vector<8x1xf32>
    %22 = vector.broadcast %21 : vector<8x1xf32> to vector<8x128xf32>
    %23 = arith.subf %17, %22 : vector<8x128xf32>
    %24 = arith.mulf %23, %23 : vector<8x128xf32>
    %cst_13 = arith.constant dense<0.000000e+00> : vector<8xf32>
    %25 = vector.multi_reduction <add>, %24, %cst_13 [1] : vector<8x128xf32> to vector<8xf32>
    %26 = vector.shape_cast %25 : vector<8xf32> to vector<8x1xf32>
    %cst_14 = arith.constant 1.280000e+02 : f32
    %27 = vector.broadcast %cst_14 : f32 to vector<8x1xf32>
    %28 = arith.divf %26, %27 : vector<8x1xf32>
    %cst_15 = arith.constant 1.000000e-07 : f32
    %29 = vector.broadcast %cst_15 : f32 to vector<8x1xf32>
    %30 = arith.addf %28, %29 : vector<8x1xf32>
    %31 = math.rsqrt %30 : vector<8x1xf32>
    %32 = vector.extract_strided_slice %5 {offsets = [1, 0], sizes = [1, 128], strides = [1, 1]} : vector<3x128xf32> to vector<1x128xf32>
    %33 = vector.broadcast %31 : vector<8x1xf32> to vector<8x128xf32>
    %34 = vector.broadcast %32 : vector<1x128xf32> to vector<8x128xf32>
    %35 = arith.mulf %33, %34 : vector<8x128xf32>
    %36 = vector.broadcast %21 : vector<8x1xf32> to vector<8x128xf32>
    %37 = arith.subf %17, %36 : vector<8x128xf32>
    %38 = arith.mulf %37, %35 : vector<8x128xf32>
    %39 = vector.extract_strided_slice %5 {offsets = [2, 0], sizes = [1, 128], strides = [1, 1]} : vector<3x128xf32> to vector<1x128xf32>
    %40 = vector.broadcast %39 : vector<1x128xf32> to vector<8x128xf32>
    %41 = arith.addf %38, %40 : vector<8x128xf32>
    %42 = arith.truncf %41 : vector<8x128xf32> to vector<8x128xbf16>
    %c0_16 = arith.constant 0 : index
    %c0_17 = arith.constant 0 : index
    %c0_18 = arith.constant 0 : index
    %43 = vector.load %arg4[%c0_16, %c0_17, %c0_18] : memref<1x128x128xbf16, #tpu.memory_space<vmem>>, vector<1x128x128xbf16>
    %44 = vector.shape_cast %43 : vector<1x128x128xbf16> to vector<128x128xbf16>
    %cst_19 = arith.constant dense<0.000000e+00> : vector<8x128xf32>
    %45 = tpu.matmul %42, %44, %cst_19 {dimension_numbers = #tpu.dot_dimension_numbers<[1], [0], [0], [1], [0, 0, 1, 1], [], []>} : vector<8x128xbf16>, vector<128x128xbf16>, vector<8x128xf32> -> vector<8x128xf32>
    %c0_20 = arith.constant 0 : index
    %c0_21 = arith.constant 0 : index
    %c0_22 = arith.constant 0 : index
    %46 = vector.load %arg5[%c0_20, %c0_21, %c0_22] : memref<1x1x128xf32, #tpu.memory_space<vmem>>, vector<1x1x128xf32>
    %47 = vector.shape_cast %46 : vector<1x1x128xf32> to vector<1x128xf32>
    %48 = vector.broadcast %47 : vector<1x128xf32> to vector<8x128xf32>
    %49 = arith.addf %45, %48 : vector<8x128xf32>
    %c0_23 = arith.constant 0 : index
    %c0_24 = arith.constant 0 : index
    %c0_25 = arith.constant 0 : index
    %50 = vector.load %arg6[%c0_23, %c0_24, %c0_25] : memref<1x8x128xf32, #tpu.memory_space<vmem>>, vector<1x8x128xf32>
    %51 = vector.shape_cast %50 : vector<1x8x128xf32> to vector<8x128xf32>
    %52 = vector.shape_cast %49 : vector<8x128xf32> to vector<1x8x128xf32>
    tpu.vector_store %arg6[%c0_23, %c0_24, %c0_25], %52 {strides = array<i32>} : memref<1x8x128xf32, #tpu.memory_space<vmem>>, vector<1x8x128xf32>,
    return
  }
  func.func @transform_0(%arg0: i32) -> (i32, i32, i32) {
    %c0_i32 = arith.constant 0 : i32
    %c0_i32_0 = arith.constant 0 : i32
    %c0_i32_1 = arith.constant 0 : i32
    return %arg0, %c0_i32, %c0_i32_0 : i32, i32, i32
  }
  func.func @transform_1(%arg0: i32) -> (i32, i32, i32) {
    %c0_i32 = arith.constant 0 : i32
    %c0_i32_0 = arith.constant 0 : i32
    %c0_i32_1 = arith.constant 0 : i32
    return %arg0, %c0_i32, %c0_i32_0 : i32, i32, i32
  }
  func.func @transform_2(%arg0: i32) -> (i32, i32, i32) {
    %c0_i32 = arith.constant 0 : i32
    %c0_i32_0 = arith.constant 0 : i32
    %c0_i32_1 = arith.constant 0 : i32
    return %arg0, %c0_i32, %c0_i32_0 : i32, i32, i32
  }
  func.func @transform_3(%arg0: i32) -> (i32, i32, i32) {
    %c0_i32 = arith.constant 0 : i32
    %c0_i32_0 = arith.constant 0 : i32
    %c0_i32_1 = arith.constant 0 : i32
    return %arg0, %c0_i32, %c0_i32_0 : i32, i32, i32
  }
  func.func @transform_4(%arg0: i32) -> (i32, i32, i32) {
    %c0_i32 = arith.constant 0 : i32
    %c0_i32_0 = arith.constant 0 : i32
    %c0_i32_1 = arith.constant 0 : i32
    return %arg0, %c0_i32, %c0_i32_0 : i32, i32, i32
  }
  func.func @transform_5(%arg0: i32) -> (i32, i32, i32) {
    %c0_i32 = arith.constant 0 : i32
    %c0_i32_0 = arith.constant 0 : i32
    %c0_i32_1 = arith.constant 0 : i32
    return %arg0, %c0_i32, %c0_i32_0 : i32, i32, i32
  }
}

</mosaic_0001>

<bundles_post_ra>
// kernel: tpu_custom_call.1
= control target key start
LH: loop header
LB: loop body
LE: loop exit
PB: predicated region body
PF: predicated region fallthrough
CT: control target
= control target key end

     0   :  { %s1526_s0 = inlined_call_operand.hbm [shape: bf16[6,8,128], index: 0, kind: input, shape index: {}]   ;;  %s1527_s1 = inlined_call_operand.hbm [shape: bf16[6,128,128], index: 1, kind: input, shape index: {}]   ;;  %s1528_s2 = inlined_call_operand.hbm [shape: f32[6,3,128], index: 2, kind: input, shape index: {}]   ;;  %s1529_s3 = inlined_call_operand.hbm [shape: bf16[6,128,128], index: 3, kind: input, shape index: {}]   ;;  %s1530_s4 = inlined_call_operand.vmem [shape: f32[6,1,128], index: 4, kind: input, shape index: {}]   ;;  %s1531_s5 = inlined_call_operand.hbm [shape: f32[6,8,128], index: 5, kind: output, shape index: {}]  }
   0x1   :  { %1542 = sst [smem:[#allocation16_spill]] %s1527_s1 }
   0x2   :  { %10 = vsyncpa [#allocation3], 0 }
   0x3   :  { %12 = vsyncpa [#allocation3 + $0x1], 0 }
   0x4   :  { %13 = vsyncpa [#allocation6], 0 }
   0x5   :  { %15 = vsyncpa [#allocation6 + $0x1], 0 }
   0x6   :  { %16 = vsyncpa [#allocation9], 0 }
   0x7   :  { %18 = vsyncpa [#allocation9 + $0x1], 0 }
   0x8   :  { %19 = vsyncpa [#allocation4], 0 }
   0x9   :  { %21 = vsyncpa [#allocation4 + $0x1], 0  ;;  %s1198_s18 = smov 0   ;;  %s1200_s19 = smov 0  }
   0xa   :  { %s1202_s20 = smov 0   ;;  %s1204_s21 = smov 0  }
   0xb LB: > { %s1219_s22 = sadd.s32 4294967295, %s1157_s21   ;;  %s778_s23 = sadd.s32 4294967294, %s1157_s21   ;;  %s1157_s21 = sphi %s1204_s21, %s1568_s21   ;;  %s1153_s20 = sphi %s1202_s20, %s1567_s20   ;;  %s1149_s19 = sphi %s1200_s19, %s1566_s19   ;;  %s1145_s18 = sphi %s1198_s18, %s1565_s18  }
   0xc   : > { %s1223_s24 = sadd.s32 1, %s1157_s21   ;;  %s34_s25 = sadd.s32 1, %s1153_s20 }
   0xd   : > { %s31_s26 = ssub.s32 %s1157_s21, %s1223_s24  ;;  %p41_p0 = scmp.ne.s32.totalorder %s1153_s20, %s1149_s19 }
   0xe   : > { %p32_p1 = scmp.eq.s32.totalorder %s31_s26, 0  ;;  %p42_p2 = scmp.eq.s32.totalorder %s1157_s21, 0 }
   0xf   : > { %p47_p3 = scmp.ne.s32.totalorder %s1149_s19, %s1145_s18  ;;  %p48_p4 = scmp.eq.s32.totalorder %s1219_s22, 0 }
  0x10   : > { %s1235_s27 = scalar_select %p32_p1, %s1153_s20, %s34_s25  }
  0x11   : > { %p43_p5 = por %p42_p2, %p41_p0  ;;  %p1237_p6 = por %p48_p4, %p47_p3 }
  0x12   : > { %1543 = sst [smem:[#allocation15_spill]] %s1235_s27  ;;  %p175_p7 = scmp.eq.s32.totalorder %s1219_s22, 5 }
  0x13   : > { %s1544_s28 = scalar_select %p1237_p6, 1, 0 }
  0x14   : > { %p181_p8 = scmp.eq.s32.totalorder %s778_s23, 5  ;;  %p905_p9 = scmp.lt.s32.totalorder %s1157_s21, 6 }
  0x15   : > { %p1243_p10 = por %p175_p7, %p41_p0  ;;  %s1252_s6 = sand.u32 1, %s1153_s20  }
  0x16   : > { %p1247_p11 = por %p181_p8, %p47_p3  ;;  %p1254_p12 = pnand %p905_p9, %p43_p5 }
  0x17   : > { %s1545_s29 = scalar_select %p1243_p10, 1, 0 }
  0x18   : > { %s1546_s30 = scalar_select %p1247_p11, 1, 0 }
  0x19   : > { %s1547_s7 = scalar_select %p1254_p12, 1, 0 }
  0x1a   : > { %s219_s8 = sand.u32 1, %s1157_s21   ;;  %s1534_s9 = sshll.u32 %s1252_s6, 6 }
  0x1b   : > { %s1537_s10 = sshll.u32 %s1157_s21, 10  ;;  %s1548_s1 = sld [smem:[#allocation16_spill]] }
  0x1c   : > { %s223_s14 = scalar_lea.vmem [#allocation5], %s1534_s9  ;;  %s1273_s16 = scalar_lea.sflag [#allocation6], %s219_s8 }
  0x1d   : > { %s230_s15 = sshll.u32 %s223_s14, 4  ;;  %p1279_p1 = pneg %p1254_p12  ;;  %s1270_s15 = int_to_ptr.vmem [resolvable:$true] %s230_s15 }
  0x21   : > { %s1266_s13 = scalar_lea.hbm %s1548_s1, %s1537_s10  ;;  %s968_s11 = scalar_lea.hbm %s1548_s1, 6144 }
  0x22   : > { %s963_s17 = scalar_lea.hbm %s1266_s13, 1024  ;;  %p969_p4 = scmp.lt.u32.totalorder %s1266_s13, %s1548_s1 }
  0x23   : > { %p964_p0 = scmp.ne.s32.totalorder %s1266_s13, %s963_s17  ;;  %p970_p5 = scmp.lt.u32.totalorder %s968_s11, %s963_s17 }
  0x24   : > { %p972_p8 = scmp.lt.u32.totalorder %s963_s17, %s1266_s13 }
  0x25   : > { %p966_p2 = pnand %p1279_p1, %p964_p0  ;;  %p971_p7 = por %p970_p5, %p969_p4 }
  0x27   : > { %p967_p3 = pneg %p966_p2  ;;  %p973_p9 = por %p972_p8, %p971_p7 }
  0x29   : > { %p974_p13 = pnand %p973_p9, %p967_p3 }
  0x2b   : > { %977 = shalt.err (!%p974_p13)
}
  0x2c   : > { %s978_s8 = scalar_lea.vmem %s1270_s15, 1024  ;;  %s1159_s25 = smov [#allocation5]  }
  0x2d   : > { %p979_p0 = scmp.ne.s32.totalorder %s1270_s15, %s978_s8  ;;  %s983_s26 = sshll.u32 %s1159_s25, 4  ;;  %s984_s26 = int_to_ptr.vmem [resolvable:$false] %s983_s26 }
  0x2e   : > { %s985_s12 = scalar_lea.vmem %s984_s26, 2048  ;;  %p986_p10 = scmp.lt.s32.totalorder %s1270_s15, %s984_s26 }
  0x2f   : > { %p981_p2 = pnand %p979_p0, %p1279_p1  ;;  %p987_p6 = scmp.lt.s32.totalorder %s985_s12, %s978_s8 }
  0x31   : > { %p982_p11 = pneg %p981_p2  ;;  %p988_p4 = por %p987_p6, %p986_p10 }
  0x33   : > { %p989_p5 = pnand %p988_p4, %p982_p11 }
  0x35   : > { %992 = shalt.err (!%p989_p5)
}
  0x36   : > { %s1535_s17 = smov 64   ;;  %s1536_s11 = smov 4  }
  0x37   : > { %894 = dma.hbm_to_vmem [thread:$0]  (!%p1254_p12), %s1266_s13, 1024, %s1270_s15, %s1273_s16, %s1535_s17, %s1535_s17, %s1536_s11  }
  0x38   : > { %p283_p6 = scmp.lt.s32.totalorder %s1157_s21, 7  ;;  %s1539_s14 = sshll.u32 %s1252_s6, 2 }
  0x39   : > { %s1538_s8 = sshll.u32 %s1157_s21, 6  ;;  %p1550_p10 = scmp.ge.s32.totalorder %s1157_s21, 1 }
  0x3a   : > { %s1320_s9 = scalar_lea.hbm %s1526_s0, %s1538_s8  ;;  %s205_s13 = scalar_lea.vmem [#allocation2], %s1539_s14 }
  0x3b   : > { %p1311_p11 = pnand %p1550_p10, %p283_p6  ;;  %s212_s15 = sshll.u32 %s205_s13, 4  ;;  %s213_s15 = int_to_ptr.vmem [resolvable:$true] %s212_s15 }
  0x3c   : > { %s202_s17 = scalar_lea.sflag [#allocation3], %s1252_s6  ;;  %s993_s11 = scalar_lea.hbm %s1320_s9, 64 }
  0x3d   : > { %s1551_s25 = scalar_select %p1311_p11, 1, 0 }
  0x3e   : > { %p994_p13 = scmp.ne.s32.totalorder %s1320_s9, %s993_s11  ;;  %s998_s26 = scalar_lea.hbm %s1526_s0, 384 }
  0x3f   : > { %p999_p8 = scmp.lt.u32.totalorder %s1320_s9, %s1526_s0  ;;  %p1000_p9 = scmp.lt.u32.totalorder %s998_s26, %s993_s11 }
  0x40   : > { %p996_p3 = pnand %p994_p13, %p1279_p1  ;;  %p1002_p2 = scmp.lt.u32.totalorder %s993_s11, %s1320_s9 }
  0x41   : > { %p1001_p0 = por %p1000_p9, %p999_p8 }
  0x42   : > { %p997_p7 = pneg %p996_p3 }
  0x43   : > { %p1003_p4 = por %p1002_p2, %p1001_p0 }
  0x45   : > { %p1004_p5 = pnand %p1003_p4, %p997_p7 }
  0x47   : > { %1007 = shalt.err (!%p1004_p5)
}
  0x48   : > { %s1008_s13 = scalar_lea.vmem %s213_s15, 64  ;;  %s1162_s14 = smov [#allocation2]  }
  0x49   : > { %p1009_p6 = scmp.ne.s32.totalorder %s213_s15, %s1008_s13  ;;  %s1013_s27 = sshll.u32 %s1162_s14, 4  ;;  %s1014_s27 = int_to_ptr.vmem [resolvable:$false] %s1013_s27 }
  0x4a   : > { %s1015_s1 = scalar_lea.vmem %s1014_s27, 128  ;;  %p1016_p3 = scmp.lt.s32.totalorder %s213_s15, %s1014_s27 }
  0x4b   : > { %p1011_p10 = pnand %p1009_p6, %p1279_p1  ;;  %p1017_p11 = scmp.lt.s32.totalorder %s1015_s1, %s1008_s13 }
  0x4d   : > { %p1012_p13 = pneg %p1011_p10  ;;  %p1018_p12 = por %p1017_p11, %p1016_p3 }
  0x4f   : > { %p1019_p8 = pnand %p1018_p12, %p1012_p13 }
  0x51   : > { %1022 = shalt.err (!%p1019_p8)
}
  0x52   : > { %p1552_p9 = scmp.ne.s32.totalorder %s1547_s7, 0  ;;  %s1553_s10 = sshll.u32 %s1157_s21, 6 }
  0x53   : > { %s1347_s26 = scalar_lea.hbm %s1528_s2, %s1553_s10  ;;  %s1554_s14 = sshll.u32 %s1252_s6, 2 }
  0x54   : > { %891 = dma.hbm_to_vmem [thread:$0]  (!%p1552_p9), %s1320_s9, 64, %s213_s15, %s202_s17  }
  0x55   : > { %s244_s27 = scalar_lea.vmem [#allocation7], %s1554_s14  ;;  %s1023_s13 = scalar_lea.hbm %s1347_s26, 64 }
  0x56   : > { %s251_s12 = sshll.u32 %s244_s27, 4  ;;  %p1024_p12 = scmp.ne.s32.totalorder %s1347_s26, %s1023_s13  ;;  %s252_s12 = int_to_ptr.vmem [resolvable:$true] %s251_s12 }
  0x57   : > { %s1028_s15 = scalar_lea.hbm %s1528_s2, 384  ;;  %p1029_p0 = scmp.lt.u32.totalorder %s1347_s26, %s1528_s2 }
  0x58   : > { %p1026_p11 = pnand %p1024_p12, %p1279_p1  ;;  %p1030_p2 = scmp.lt.u32.totalorder %s1028_s15, %s1023_s13 }
  0x59   : > { %p1032_p5 = scmp.lt.u32.totalorder %s1023_s13, %s1347_s26 }
  0x5a   : > { %p1027_p7 = pneg %p1026_p11  ;;  %p1031_p4 = por %p1030_p2, %p1029_p0 }
  0x5c   : > { %p1033_p6 = por %p1032_p5, %p1031_p4 }
  0x5e   : > { %p1034_p10 = pnand %p1033_p6, %p1027_p7 }
  0x60   : > { %1037 = shalt.err (!%p1034_p10)
}
  0x61   : > { %s1038_s11 = scalar_lea.vmem %s252_s12, 64  ;;  %s1163_s8 = smov [#allocation7]  }
  0x62   : > { %p1039_p13 = scmp.ne.s32.totalorder %s252_s12, %s1038_s11  ;;  %s1043_s14 = sshll.u32 %s1163_s8, 4  ;;  %s1044_s14 = int_to_ptr.vmem [resolvable:$false] %s1043_s14 }
  0x63   : > { %s1045_s27 = scalar_lea.vmem %s1044_s14, 128  ;;  %p1046_p12 = scmp.lt.s32.totalorder %s252_s12, %s1044_s14 }
  0x64   : > { %p1041_p3 = pnand %p1039_p13, %p1279_p1  ;;  %p1047_p11 = scmp.lt.s32.totalorder %s1045_s27, %s1038_s11 }
  0x66   : > { %p1042_p8 = pneg %p1041_p3  ;;  %p1048_p9 = por %p1047_p11, %p1046_p12 }
  0x68   : > { %p1049_p0 = pnand %p1048_p9, %p1042_p8 }
  0x6a   : > { %1052 = shalt.err (!%p1049_p0)
}
  0x6b   : > { %p1555_p2 = scmp.ne.s32.totalorder %s1547_s7, 0  ;;  %s1556_s13 = sshll.u32 %s1157_s21, 10 }
  0x6c   : > { %s1374_s15 = scalar_lea.hbm %s1529_s3, %s1556_s13  ;;  %s1557_s1 = sshll.u32 %s1252_s6, 6 }
  0x6d   : > { %897 = dma.hbm_to_vmem [thread:$0]  (!%p1555_p2), %s1347_s26, 64, %s252_s12, %s1273_s16  }
  0x6e   : > { %s262_s10 = scalar_lea.vmem [#allocation8], %s1557_s1  ;;  %s259_s8 = scalar_lea.sflag [#allocation9], %s1252_s6 }
  0x6f   : > { %s269_s11 = sshll.u32 %s262_s10, 4  ;;  %s1053_s14 = scalar_lea.hbm %s1374_s15, 1024  ;;  %s1378_s11 = int_to_ptr.vmem [resolvable:$true] %s269_s11 }
  0x70   : > { %p1054_p9 = scmp.ne.s32.totalorder %s1374_s15, %s1053_s14  ;;  %s1058_s12 = scalar_lea.hbm %s1529_s3, 6144 }
  0x71   : > { %p1059_p5 = scmp.lt.u32.totalorder %s1374_s15, %s1529_s3  ;;  %p1060_p6 = scmp.lt.u32.totalorder %s1058_s12, %s1053_s14 }
  0x72   : > { %p1056_p7 = pnand %p1054_p9, %p1279_p1  ;;  %p1062_p13 = scmp.lt.u32.totalorder %s1053_s14, %s1374_s15 }
  0x73   : > { %p1061_p10 = por %p1060_p6, %p1059_p5 }
  0x74   : > { %p1057_p4 = pneg %p1056_p7 }
  0x75   : > { %p1063_p3 = por %p1062_p13, %p1061_p10 }
  0x77   : > { %p1064_p8 = pnand %p1063_p3, %p1057_p4 }
  0x79   : > { %1067 = shalt.err (!%p1064_p8)
}
  0x7a   : > { %s1068_s9 = scalar_lea.vmem %s1378_s11, 1024  ;;  %s1164_s17 = smov [#allocation8]  }
  0x7b   : > { %p1069_p12 = scmp.ne.s32.totalorder %s1378_s11, %s1068_s9  ;;  %s1073_s1 = sshll.u32 %s1164_s17, 4  ;;  %s1074_s1 = int_to_ptr.vmem [resolvable:$false] %s1073_s1 }
  0x7c   : > { %s1075_s10 = scalar_lea.vmem %s1074_s1, 2048  ;;  %p1076_p9 = scmp.lt.s32.totalorder %s1378_s11, %s1074_s1 }
  0x7d   : > { %p1071_p11 = pnand %p1069_p12, %p1279_p1  ;;  %p1077_p7 = scmp.lt.s32.totalorder %s1075_s10, %s1068_s9 }
  0x7f   : > { %p1072_p0 = pneg %p1071_p11  ;;  %p1078_p5 = por %p1077_p7, %p1076_p9 }
  0x81   : > { %p1079_p6 = pnand %p1078_p5, %p1072_p0 }
  0x83   : > { %1082 = shalt.err (!%p1079_p6)
}
  0x84   : > { %s1558_s14 = smov 4   ;;  %s1559_s16 = smov 64  }
  0x85   : > { %900 = dma.hbm_to_vmem [thread:$0]  (!%p1555_p2), %s1374_s15, 1024, %s1378_s11, %s259_s8, %s1559_s16, %s1559_s16, %s1558_s14  }
  0x86   : > { %p1560_p1 = scmp.ne.s32.totalorder %s1551_s25, 0 }
  0x87   : > { %s1410_s23 = sand.u32 (!%p1560_p1), 1, %s1149_s19   ;;  %p1561_p4 = scmp.ne.s32.totalorder (!%p1560_p1), %s1544_s28, 0 }
  0x88   : > { %287 = sbr.rel (%p1560_p1) target bundleno = 956 (0x3bc), region = 40  ;;  %s792_s26 = sshll.u32 (!%p1560_p1), %s1410_s23, 2 }
  0x89   : > { %s290_s12 = scalar_lea.sflag (!%p1560_p1), [#allocation3], %s1410_s23  ;;  %s1414_s7 = scalar_lea.vmem (!%p1560_p1), [#allocation2], %s792_s26 }
  0x8f   : > { %1128 = dma.done.wait (%p1561_p4), %s290_s12, 64  }
  0x90   : > { %1130 = vsyncadd (%p1561_p4), %s290_s12, 4294967232  ;;  %s298_s6 = sand.u32 1, %s1219_s22   ;;  %s793_s25 = sshll.u32 %s1410_s23, 6 }
  0x91   : > { %s299_s15 = scalar_lea.sflag [#allocation6], %s298_s6  ;;  %s1422_s11 = scalar_lea.vmem [#allocation5], %s793_s25 }
  0x92   : > { %1132 = dma.done.wait (%p1561_p4), %s299_s15, 1088  }
  0x93   : > { %1134 = vsyncadd (%p1561_p4), %s299_s15, 4294966208  ;;  %s1428_s8 = scalar_lea.vmem [#allocation7], %s792_s26  ;;  %s317_s27 = scalar_lea.sflag [#allocation9], %s1410_s23 }
  0x94   : > { %s1431_s13 = scalar_lea.vmem [#allocation8], %s793_s25 }
  0x95   : > { %1136 = dma.done.wait (%p1561_p4), %s317_s27, 1024  }
  0x96   : > { %1138 = vsyncadd (%p1561_p4), %s317_s27, 4294966272  ;;  %v1165_v0 = vmov 0.0   ;;  %vm1166_vm0 = vmmov 0   ;;  %v943_v1 = vld [vmem:[%s1422_s11] sm:$0xff]   ;;  %v944_v2 = vld [vmem:[%s1422_s11 + $0x8] sm:$0xff]   ;;  %v387_v10 = vlaneseq  ;;  %p365_p2 = scmp.lt.s32.totalorder %s1219_s22, 5 }
  0x97   : > { %838 = vmatprep.subr.bf16.mxu0 %v1165_v0  ;;  %854 = vmatprep.mubr.msk.bf16.mxu0 %vm1166_vm0, %v1165_v0  ;;  %v945_v3 = vld [vmem:[%s1422_s11 + $0x10] sm:$0xff]   ;;  %v946_v4 = vld [vmem:[%s1422_s11 + $0x18] sm:$0xff]   ;;  %v947_v5 = vld [vmem:[%s1422_s11 + $0x20] sm:$0xff]   ;;  %s796_s9 = sshll.u32 %s1410_s23, 3  ;;  %s815_s14 = sshll.u32 %s1219_s22, 7 }
  0x98   : > { %858 = vmatprep.subr.bf16.mxu1 %v1165_v0  ;;  %874 = vmatprep.mubr.msk.bf16.mxu1 %vm1166_vm0, %v1165_v0  ;;  %v948_v6 = vld [vmem:[%s1422_s11 + $0x28] sm:$0xff]   ;;  %v949_v7 = vld [vmem:[%s1422_s11 + $0x30] sm:$0xff]   ;;  %v950_v8 = vld [vmem:[%s1422_s11 + $0x38] sm:$0xff]   ;;  %v388_v11 = vshrl.u32 %v387_v10, 7  ;;  %s366_s28 = scalar_select %p365_p2, %s1219_s22, 5 }
  0x99   : > { %839 = vmatpush3.bf16.msra.mxu0 %v943_v1  ;;  %v369_v9 = vld [vmem:[%s1414_s7] sm:$0xf]  ;;  %v386_v13 = vld [vmem:[%s1428_s8] sm:$0x7]  ;;  %v951_v25 = vld [vmem:[%s1431_s13] sm:$0xff]   ;;  %s364_s16 = scalar_lea.vmem [#allocation10], %s796_s9  ;;  %s1483_s6 = scalar_lea.hbm %s1531_s5, %s815_s14 }
  0x9a   : > { %840 = vmatprep.subr.bf16.mxu0 %v1165_v0  ;;  %v389_v12 = vsub.s32 0, %v388_v11  ;;  %859 = vmatpush3.bf16.msra.mxu1 %v951_v25  ;;  %v952_v26 = vld [vmem:[%s1431_s13 + $0x8] sm:$0xff]   ;;  %v953_v31 = vld [vmem:[%s1431_s13 + $0x10] sm:$0xff]   ;;  %v954_v32 = vld [vmem:[%s1431_s13 + $0x18] sm:$0xff]   ;;  %v497_v40 = vsub.s32 1, %v388_v11  ;;  %v503_v42 = vsub.s32 2, %v388_v11  ;;  %s367_s10 = scalar_lea.vmem %s1530_s4, %s366_s28 }
  0x9b   : > { %860 = vmatprep.subr.bf16.mxu1 %v1165_v0  ;;  %v955_v33 = vld [vmem:[%s1431_s13 + $0x20] sm:$0xff]   ;;  %v956_v34 = vld [vmem:[%s1431_s13 + $0x28] sm:$0xff]   ;;  %v957_v35 = vld [vmem:[%s1431_s13 + $0x30] sm:$0xff]   ;;  %s633_s26 = sshll.u32 %s364_s16, 4  ;;  %s620_s25 = scalar_lea.sflag [#allocation4], %s1410_s23  ;;  %s1485_s26 = int_to_ptr.vmem [resolvable:$true] %s633_s26 }
  0x9c   : > { %v390_v14 = vrot.slane %v386_v13, %v389_v12  ;;  %v958_v36 = vld [vmem:[%s1431_s13 + $0x38] sm:$0xff]   ;;  %v498_v41 = vrot.slane %v386_v13, %v497_v40  ;;  %v504_v45 = vrot.slane %v386_v13, %v503_v42  ;;  %v805_v49 = vld [vmem:[%s367_s10] ss:$0 sm:$0xff]  ;;  %s1083_s22 = scalar_lea.vmem %s1485_s26, 128  ;;  %p1562_p13 = scmp.ne.s32.totalorder %s1545_s29, 0 }
  0x9d   : > { %841 = vmatpush3.bf16.msra.mxu0 %v944_v2  ;;  %p1084_p10 = scmp.ne.s32.totalorder %s1485_s26, %s1083_s22  ;;  %s1167_s15 = smov [#allocation10]  }
  0x9e   : > { %842 = vmatprep.subr.bf16.mxu0 %v1165_v0  ;;  %861 = vmatpush3.bf16.msra.mxu1 %v952_v26  ;;  %s1087_s11 = sshll.u32 %s1167_s15, 4  ;;  %s1088_s11 = int_to_ptr.vmem [resolvable:$false] %s1087_s11 }
  0x9f   : > { %862 = vmatprep.subr.bf16.mxu1 %v1165_v0  ;;  %p1085_p3 = pnand %p1084_p10, %p1562_p13  ;;  %s1089_s8 = scalar_lea.vmem %s1088_s11, 256 }
  0xa0   : > { %p1090_p12 = scmp.lt.s32.totalorder %s1485_s26, %s1088_s11  ;;  %p1091_p11 = scmp.lt.s32.totalorder %s1089_s8, %s1083_s22 }
  0xa1   : > { %843 = vmatpush3.bf16.msra.mxu0 %v945_v3  ;;  %p1086_p8 = pneg %p1085_p3 }
  0xa2   : > { %844 = vmatprep.subr.bf16.mxu0 %v1165_v0  ;;  %863 = vmatpush3.bf16.msra.mxu1 %v953_v31  ;;  %p1092_p0 = por %p1091_p11, %p1090_p12 }
  0xa3   : > { %864 = vmatprep.subr.bf16.mxu1 %v1165_v0 }
  0xa4   : > { %p1093_p9 = pnand %p1092_p0, %p1086_p8 }
  0xa5   : > { %845 = vmatpush3.bf16.msra.mxu0 %v946_v4 }
  0xa6   : > { %846 = vmatprep.subr.bf16.mxu0 %v1165_v0  ;;  %865 = vmatpush3.bf16.msra.mxu1 %v954_v32 }
  0xa7   : > { %866 = vmatprep.subr.bf16.mxu1 %v1165_v0 }
  0xa9   : > { %847 = vmatpush3.bf16.msra.mxu0 %v947_v5 }
  0xaa   : > { %848 = vmatprep.subr.bf16.mxu0 %v1165_v0  ;;  %867 = vmatpush3.bf16.msra.mxu1 %v955_v33 }
  0xab   : > { %868 = vmatprep.subr.bf16.mxu1 %v1165_v0 }
  0xad   : > { %849 = vmatpush3.bf16.msra.mxu0 %v948_v6 }
  0xae   : > { %850 = vmatprep.subr.bf16.mxu0 %v1165_v0  ;;  %869 = vmatpush3.bf16.msra.mxu1 %v956_v34 }
  0xaf   : > { %870 = vmatprep.subr.bf16.mxu1 %v1165_v0 }
  0xb1   : > { %851 = vmatpush3.bf16.msra.mxu0 %v949_v7 }
  0xb2   : > { %852 = vmatprep.subr.bf16.mxu0 %v1165_v0  ;;  %871 = vmatpush3.bf16.msra.mxu1 %v957_v35 }
  0xb3   : > { %872 = vmatprep.subr.bf16.mxu1 %v1165_v0 }
  0xb5   : > { %853 = vmatpush3.bf16.msra.mxu0 %v950_v8 }
  0xb6   : > { %873 = vmatpush3.bf16.msra.mxu1 %v958_v36 }
  0xb8   : > { %855 = vmatmul.mubr.bf16.vlgmr.msra.gmra.mrb[0].mxu0 %v369_v9 }
 0x18b   : > { %v473_v15 = vpop.f32.mrb[0].mxu0 }
 0x18c   : > { %v474_v16 = vadd.f32 %v473_v15, %v390_v14  ;;  %v856_v17 = vpop.f32.mrb[1].mxu0 }
 0x18d   : > { %v476_v18 = vpop.f32.mrb[2].mxu0 }
 0x18e   : > { %v480_v19 = vmul.f32 0.70710677, %v474_v16  ;;  %v857_v20 = vpop.f32.mrb[3].mxu0  ;;  %v479_v22 = vmul.f32 0.5, %v474_v16 }
 0x190   : > { %959 = verf.f32 %v480_v19 }
 0x19a   : > { %v960_v21 = vpop.eup %959 }
 0x19b   : > { %v482_v23 = vadd.f32 1.0, %v960_v21 }
 0x19d   : > { %v483_v24 = vmul.f32 %v482_v23, %v479_v22 }
 0x19f   : > { %484 = vadd.xlane.f32.xlu0 %v483_v24 }
 0x22c   : > { %v485_v27 = vpop.xlane.xlu0 %484 }
 0x22d   : > { %v487_v28 = vmul.f32 0.0078125, %v485_v27 }
 0x22f   : > { %v488_v29 = vsub.f32 %v483_v24, %v487_v28 }
 0x231   : > { %v489_v30 = vmul.f32 %v488_v29, %v488_v29 }
 0x233   : > { %490 = vadd.xlane.f32.xlu0 %v489_v30 }
 0x2c0   : > { %v491_v37 = vpop.xlane.xlu0 %490 }
 0x2c1   : > { %v492_v38 = vmul.f32 0.0078125, %v491_v37 }
 0x2c3   : > { %v493_v39 = vadd.f32 1e-07, %v492_v38 }
 0x2c5   : > { %961 = vrsqrt.f32 %v493_v39 }
 0x2cf   : > { %v962_v43 = vpop.eup %961 }
 0x2d0   : > { %v499_v44 = vmul.f32 %v962_v43, %v498_v41 }
 0x2d2   : > { %v500_v46 = vmul.f32 %v499_v44, %v488_v29 }
 0x2d4   : > { %v505_v47 = vadd.f32 %v504_v45, %v500_v46 }
 0x2d6   : > { %v506_v48 = vpack.c.bf16 %v505_v47, %v505_v47 }
 0x2d8   : > { %875 = vmatmul.mubr.bf16.vlgmr.msra.gmra.mrb[0].mxu1 %v506_v48 }
 0x3ab   : > { %v612_v50 = vpop.f32.mrb[0].mxu1 }
 0x3ac   : > { %v613_v51 = vadd.f32 %v805_v49, %v612_v50  ;;  %v876_v52 = vpop.f32.mrb[1].mxu1 }
 0x3ad   : > { %v615_v53 = vpop.f32.mrb[2].mxu1 }
 0x3ae   : > { %618 = vst [vmem:[%s364_s16] sm:$0xff] %v613_v51  ;;  %v877_v54 = vpop.f32.mrb[3].mxu1 }
 0x3af   : > { %1096 = shalt.err (!%p1093_p9)
}
 0x3b0   : > { %s1097_s23 = scalar_lea.hbm %s1483_s6, 128  ;;  %s1101_s28 = scalar_lea.hbm %s1531_s5, 768 }
 0x3b1   : > { %p1098_p7 = scmp.ne.s32.totalorder %s1483_s6, %s1097_s23  ;;  %p1102_p1 = scmp.lt.u32.totalorder %s1483_s6, %s1531_s5 }
 0x3b2   : > { %p1103_p4 = scmp.lt.u32.totalorder %s1101_s28, %s1097_s23  ;;  %p1105_p10 = scmp.lt.u32.totalorder %s1097_s23, %s1483_s6 }
 0x3b3   : > { %p1099_p5 = pnand %p1098_p7, %p1562_p13 }
 0x3b4   : > { %p1104_p2 = por %p1103_p4, %p1102_p1 }
 0x3b5   : > { %p1100_p6 = pneg %p1099_p5 }
 0x3b6   : > { %p1106_p3 = por %p1105_p10, %p1104_p2 }
 0x3b8   : > { %p1107_p8 = pnand %p1106_p3, %p1100_p6 }
 0x3ba   : > { %1110 = shalt.err (!%p1107_p8)
}
 0x3bb   : > { %886 = dma.vmem_to_hbm [thread:$0]  (%p1562_p13), %s1485_s26, 128, %s1483_s6, %s620_s25  }
 0x3bc PF: > { %p906_p12 = scmp.ge.s32.totalorder %s1157_s21, 2  ;;  %s645_s1 = sand.u32 1, %s1145_s18  }
 0x3bd   : > { %p1563_p11 = scmp.ne.s32.totalorder %s1546_s30, 0  ;;  %s646_s10 = scalar_lea.sflag [#allocation4], %s645_s1 }
 0x3bf   : > { %p902_p0 = pnand %p906_p12, %p1563_p11 }
 0x3c1   : > { %1140 = dma.done.wait (!%p902_p0), %s646_s10, 128  }
 0x3c2   : > { %1142 = vsyncadd (!%p902_p0), %s646_s10, 4294967168  ;;  %s1564_s14 = sld [smem:[#allocation15_spill]]  ;;  %p24_p9 = scmp.ge.s32.totalorder %s1223_s24, 8  }
 0x3c3   : > { %s1565_s18 = smov %s1149_s19  ;;  %s1566_s19 = smov %s1153_s20 }
 0x3c4   : > { %s1568_s21 = smov %s1223_s24  ;;  %26 = sbr.rel (!%p24_p9) target bundleno = 11 (0xb), region = 125 }
 0x3c8   : > { %s1567_s20 = smov %s1564_s14 }
 0x3cb   :  { %651 = vsyncpa [#allocation3], 1 }
 0x3cc   :  { %653 = vsyncpa [#allocation3 + $0x1], 1 }
 0x3cd   :  { %654 = vsyncpa [#allocation6], 1 }
 0x3ce   :  { %656 = vsyncpa [#allocation6 + $0x1], 1 }
 0x3cf   :  { %657 = vsyncpa [#allocation9], 1 }
 0x3d0   :  { %659 = vsyncpa [#allocation9 + $0x1], 1 }
 0x3d1   :  { %660 = vsyncpa [#allocation4], 1 }
 0x3d2   :  { %662 = vsyncpa [#allocation4 + $0x1], 1 }

</bundles_post_ra>
